<compile_context>
chip_gen: v6e
topology: v6e:2x2x1
jax: 0.10.0
libtpu: 0.0.40
codegen_flags: <defaults>
</compile_context>

<pallas_src>
import jax
import jax.numpy as jnp
import numpy as np
from jax.experimental import pallas as pl
from jax.experimental.pallas import tpu as pltpu


def _identity_copy_kernel(x_ref, o_ref):
    # Straight pass-through of the current VMEM tile.
    o_ref[...] = x_ref[...]


_LANE_CANDIDATES = (4096, 2048, 1024, 512, 384, 256, 128)
_TARGET_TILE_BYTES = 4 * 1024 * 1024  # per buffer; x2 (double-buffer) x2 (in+out) = 16 MiB


def _pick_lane_width(n: int) -> int:
    """Widest multiple of 128 (capped at 4096) that divides n; 0 if none."""
    for cand in _LANE_CANDIDATES:
        if n % cand == 0:
            return cand
    return 0


def pest_classifier_forward(x: jax.Array) -> jax.Array:
    """PestClassifier.forward(x) == x, as an optimized Pallas copy kernel.

    NOTE: the truly optimal implementation is simply `return x` (zero HBM
    traffic); the Pallas kernel is kept only because a kernel implementation is
    required, and is made as cheap as a real copy can be.
    """
    n = x.size
    if n == 0:
        return x

    orig_shape = x.shape
    lane = _pick_lane_width(n)

    if lane == 0:
        # Total size not a multiple of 128: single whole-array block (full-extent
        # block shapes are always layout-legal). Identity-classifier inputs are
        # small, so whole-array VMEM residency is fine here.
        return pl.pallas_call(
            _identity_copy_kernel,
            out_shape=jax.ShapeDtypeStruct(x.shape, x.dtype),
            input_output_aliases={0: 0},
        )(x)

    rows = n // lane
    x2d = x.reshape(rows, lane)  # bitcast reshape: no pad, no extra HBM pass

    itemsize = x2d.dtype.itemsize
    rows_per_tile = _TARGET_TILE_BYTES // (lane * itemsize)
    # Multiple-of-32 sublane count keeps packed dtypes (bf16/int8) tile-aligned.
    rows_per_tile = max(32, (rows_per_tile // 32) * 32)
    block_rows = rows if rows <= rows_per_tile else rows_per_tile
    # Partial trailing block (rows % block_rows != 0) is masked by Pallas —
    # no padding and no degrading "block_rows -= 8" search.
    grid = (pl.cdiv(rows, block_rows),)

    out2d = pl.pallas_call(
        _identity_copy_kernel,
        out_shape=jax.ShapeDtypeStruct((rows, lane), x2d.dtype),
        grid_spec=pltpu.PrefetchScalarGridSpec(
            num_scalar_prefetch=0,
            grid=grid,
            in_specs=[pl.BlockSpec((block_rows, lane), lambda i: (i, 0))],
            out_specs=pl.BlockSpec((block_rows, lane), lambda i: (i, 0)),
        ),
        # Alias output to input: with a donated input the copy runs in place and
        # allocates no new HBM buffer (feedback item 1's "at minimum" option).
        input_output_aliases={0: 0},
        compiler_params=pltpu.CompilerParams(
            # v7x: both TensorCores take disjoint slices of the grid; harmless
            # no-op on single-TC v5e/v6e.
            dimension_semantics=("parallel",),
        ),
    )(x2d)

    return out2d.reshape(orig_shape)  # bitcast back; no slice, no astype


if __name__ == "__main__":
    key = jax.random.PRNGKey(0)
    x = jax.random.normal(key, (2, 4, 16, 16), dtype=jnp.float32)

    # Host copy for verification: x itself is donated to the jitted forward so
    # the aliased Pallas output can reuse its HBM buffer in place.
    expected = np.asarray(x)

    fwd = jax.jit(pest_classifier_forward, donate_argnums=0)
    y = jax.block_until_ready(fwd(x))

    assert y.shape == expected.shape, (y.shape, expected.shape)
    assert y.dtype == expected.dtype, (y.dtype, expected.dtype)
    assert np.array_equal(np.asarray(y), expected), "identity kernel output mismatch"

    print("KERNEL_OK")
</pallas_src>

<mosaic_0001>
module attributes {stable_mosaic.version = 11 : i64} {
  func.func @_identity_copy_kernel(%arg0: i32, %arg1: memref<1x2048xf32, #tpu.memory_space<vmem>>, %arg2: memref<1x2048xf32, #tpu.memory_space<vmem>>) attributes {dimension_semantics = [#tpu.dimension_semantics<parallel>], iteration_bounds = array<i64: 1>, scalar_prefetch = 0 : i64, scratch_operands = 0 : i64, tpu.core_type = #tpu.core_type<tc>, window_params = [{transform_indices = @transform_0, window_bounds = array<i64: 1, 2048>}, {transform_indices = @transform_1, window_bounds = array<i64: 1, 2048>}]} {
    %c0 = arith.constant 0 : index
    %c0_0 = arith.constant 0 : index
    %0 = vector.load %arg1[%c0, %c0_0] : memref<1x2048xf32, #tpu.memory_space<vmem>>, vector<1x2048xf32>
    %c0_1 = arith.constant 0 : index
    %c0_2 = arith.constant 0 : index
    %1 = vector.load %arg2[%c0_1, %c0_2] : memref<1x2048xf32, #tpu.memory_space<vmem>>, vector<1x2048xf32>
    tpu.vector_store %arg2[%c0_1, %c0_2], %0 {strides = array<i32>} : memref<1x2048xf32, #tpu.memory_space<vmem>>, vector<1x2048xf32>,
    return
  }
  func.func @transform_0(%arg0: i32) -> (i32, i32) {
    %c0_i32 = arith.constant 0 : i32
    %c0_i32_0 = arith.constant 0 : i32
    return %arg0, %c0_i32 : i32, i32
  }
  func.func @transform_1(%arg0: i32) -> (i32, i32) {
    %c0_i32 = arith.constant 0 : i32
    %c0_i32_0 = arith.constant 0 : i32
    return %arg0, %c0_i32 : i32, i32
  }
}

</mosaic_0001>

<bundles_post_ra>
// kernel: pest_classifier_forward.1
= control target key start
LH: loop header
LB: loop body
LE: loop exit
PB: predicated region body
PF: predicated region fallthrough
CT: control target
= control target key end

     0   :  { %s38_s0 = inlined_call_operand.vmem [shape: f32[1,2048], index: 0, kind: input, shape index: {}, may-alias: {0,1}]   ;;  %s39_s1 = inlined_call_operand.vmem [shape: f32[1,2048], index: 1, kind: output, shape index: {}, may-alias: {0,1}]  }
   0x1   :  { %v8_v0 = vld [vmem:[%s38_s0] sm:$0xff]  ;;  %v9_v1 = vld [vmem:[%s38_s0 + $0x8] sm:$0xff] }
   0x2   :  { %10 = vst [vmem:[%s39_s1] sm:$0xff] %v8_v0  ;;  %11 = vst [vmem:[%s39_s1 + $0x8] sm:$0xff] %v9_v1 }

</bundles_post_ra>
